<compile_context>
chip_gen: v5e
topology: v5e:2x2
jax: 0.10.0
libtpu: 0.0.40
codegen_flags: <defaults>
</compile_context>

<pallas_src>
import jax
import jax.numpy as jnp
from jax import lax
from jax.experimental import pallas as pl
from jax.experimental.pallas import tpu as pltpu


def _make_luong_kernel(bb, Lq, Lc, H, has_mask, return_weights):
    """Fused Luong-attention kernel body for a block of `bb` batch elements."""

    def kernel(*refs):
        idx = 0
        q_ref = refs[idx]; idx += 1        # (bb, Lq, H)
        ctx_ref = refs[idx]; idx += 1      # (bb, Lc, H)
        wt_ref = refs[idx]; idx += 1       # (H, H)  pre-transposed linear weight (in, out)
        b_ref = refs[idx]; idx += 1        # (1, H)
        mask_ref = None
        if has_mask:
            mask_ref = refs[idx]; idx += 1     # (bb, 1, Lc)
        o_ref = refs[idx]; idx += 1            # (bb, Lq, H)
        w_out_ref = refs[idx] if return_weights else None  # (bb, Lq, Lc)

        q = q_ref[...]       # (bb, Lq, H)
        ctx = ctx_ref[...]   # (bb, Lc, H)

        # e = Linear(context) for ALL bb batch elements in ONE MXU call:
        # collapse (bb, Lc) into the sublane axis (free retiling, Lc % 8 == 0).
        e_flat = jnp.dot(ctx.reshape(bb * Lc, H), wt_ref[...],
                         preferred_element_type=jnp.float32)     # (bb*Lc, H)
        e = (e_flat + b_ref[...]).reshape(bb, Lc, H)

        # scores = q @ e^T without materializing a transpose: contract the
        # hidden dim of both operands, batched over bb.
        s = lax.dot_general(q, e, (((2,), (2,)), ((0,), (0,))),
                            preferred_element_type=jnp.float32)  # (bb, Lq, Lc)

        if has_mask:
            s = s + mask_ref[...]        # (bb, 1, Lc) broadcast over the Lq rows

        # Numerically stable softmax over the context axis.
        m = jnp.max(s, axis=-1, keepdims=True)
        p = jnp.exp(s - m)
        w = p / jnp.sum(p, axis=-1, keepdims=True)               # (bb, Lq, Lc)

        # context mix: c = w @ context  (batched over bb, contract Lc).
        c = lax.dot_general(w, ctx, (((2,), (1,)), ((0,), (0,))),
                            preferred_element_type=jnp.float32)  # (bb, Lq, H)

        o_ref[...] = c.astype(o_ref.dtype)
        if return_weights:
            w_out_ref[...] = w.astype(w_out_ref.dtype)

    return kernel


def prepare_luong_params(weight, bias):
    """One-time parameter prep: store the nn.Linear weight as (in, out).

    `weight` is given in the PyTorch nn.Linear convention (out_features,
    in_features).  Do this ONCE at setup so no transpose/relayout op is emitted
    per forward call.
    """
    return jnp.asarray(weight).T, jnp.asarray(bias)


def _pick_batch_block(B, max_bb=8):
    """Largest divisor of B that is <= max_bb while keeping >= 2 grid steps
    whenever B >= 2 (so both TensorCores of a v7x chip get work)."""
    best = 1
    for d in range(1, min(B, max_bb) + 1):
        if B % d == 0 and (B // d >= 2 or B < 2):
            best = d
    return best


def luong_attention_forward(query, context, weight_t, bias, inf_mask=None,
                            requires_weight=False, batch_block=None):
    """Fused Pallas LuongAttention forward.

    Args:
      query:    (Lq, B, H) float32   (seq-major, like the PyTorch module)
      context:  (Lc, B, H) float32
      weight_t: (H, H)     float32   Linear weight PRE-transposed to (in, out)
      bias:     (H,)       float32
      inf_mask: (B, Lc)    float32 or None  (added to scores, broadcast over Lq)
      requires_weight: also return the attention weights (B, Lq, Lc).
      batch_block: batch elements per grid step (default: auto).
    Returns:
      c: (Lq, B, H)   [and w: (B, Lq, Lc) if requires_weight]
    """
    Lq, B, H = query.shape
    Lc, Bc, Hc = context.shape
    assert B == Bc and H == Hc, "query/context shape mismatch"
    assert weight_t.shape == (H, H) and bias.shape == (H,)

    bb = _pick_batch_block(B) if batch_block is None else batch_block
    assert B % bb == 0, "batch_block must divide the batch size"
    grid = (B // bb,)

    # Layout plumbing mirroring the module's own .transpose(0, 1) calls.
    q_b = jnp.transpose(query, (1, 0, 2))      # (B, Lq, H)
    ctx_b = jnp.transpose(context, (1, 0, 2))  # (B, Lc, H)
    b2d = bias.reshape(1, H)

    has_mask = inf_mask is not None
    kernel = _make_luong_kernel(bb, Lq, Lc, H, has_mask, requires_weight)

    in_specs = [
        pl.BlockSpec((bb, Lq, H), lambda i: (i, 0, 0)),
        pl.BlockSpec((bb, Lc, H), lambda i: (i, 0, 0)),
        pl.BlockSpec((H, H), lambda i: (0, 0)),   # constant index -> VMEM-resident
        pl.BlockSpec((1, H), lambda i: (0, 0)),   # constant index -> VMEM-resident
    ]
    args = [q_b, ctx_b, weight_t, b2d]
    if has_mask:
        in_specs.append(pl.BlockSpec((bb, 1, Lc), lambda i: (i, 0, 0)))
        args.append(jnp.asarray(inf_mask).reshape(B, 1, Lc))

    if requires_weight:
        out_shape = (jax.ShapeDtypeStruct((B, Lq, H), query.dtype),
                     jax.ShapeDtypeStruct((B, Lq, Lc), jnp.float32))
        out_specs = (pl.BlockSpec((bb, Lq, H), lambda i: (i, 0, 0)),
                     pl.BlockSpec((bb, Lq, Lc), lambda i: (i, 0, 0)))
    else:
        out_shape = jax.ShapeDtypeStruct((B, Lq, H), query.dtype)
        out_specs = pl.BlockSpec((bb, Lq, H), lambda i: (i, 0, 0))

    outs = pl.pallas_call(
        kernel,
        out_shape=out_shape,
        grid=grid,
        in_specs=in_specs,
        out_specs=out_specs,
        compiler_params=pltpu.CompilerParams(
            dimension_semantics=("parallel",)),   # batch blocks -> both v7x TCs
    )(*args)

    if requires_weight:
        c_b, w_b = outs
        return jnp.transpose(c_b, (1, 0, 2)), w_b
    return jnp.transpose(outs, (1, 0, 2))


if __name__ == "__main__":
    # Small shapes consistent with the module; hidden=128 keeps the main output
    # lane-dense; B=4 with batch_block=2 exercises the batched projection AND a
    # 2-step parallel grid.
    hidden = 128
    Lq, Lc, B = 8, 16, 4

    key = jax.random.PRNGKey(0)
    kq, kc, kw, kb, km = jax.random.split(key, 5)

    query = jax.random.normal(kq, (Lq, B, hidden), dtype=jnp.float32)
    context = jax.random.normal(kc, (Lc, B, hidden), dtype=jnp.float32)

    # nn.Linear-style init in the PyTorch (out, in) convention.
    bound = 1.0 / jnp.sqrt(jnp.float32(hidden))
    weight = jax.random.uniform(kw, (hidden, hidden), minval=-bound,
                                maxval=bound, dtype=jnp.float32)
    bias = jax.random.uniform(kb, (hidden,), minval=-bound, maxval=bound,
                              dtype=jnp.float32)
    inf_mask = jnp.where(jax.random.bernoulli(km, 0.25, (B, Lc)),
                         jnp.float32(-1e9), jnp.float32(0.0))

    # One-time setup: hoist the weight transpose out of the per-call path.
    weight_t, bias_p = prepare_luong_params(weight, bias)

    # Masked path, also returning the attention weights.
    c, w = luong_attention_forward(query, context, weight_t, bias_p,
                                   inf_mask=inf_mask, requires_weight=True)
    c = jax.block_until_ready(c)
    w = jax.block_until_ready(w)

    # Pure-JAX reference mirroring the PyTorch forward exactly.
    qb = jnp.transpose(query, (1, 0, 2))
    cb = jnp.transpose(context, (1, 0, 2))
    e_ref = cb @ weight.T + bias
    s_ref = jnp.einsum('bqh,blh->bql', qb, e_ref) + inf_mask[:, None, :]
    w_ref = jax.nn.softmax(s_ref, axis=2)
    c_ref = jnp.transpose(w_ref @ cb, (1, 0, 2))

    assert c.shape == (Lq, B, hidden)
    assert w.shape == (B, Lq, Lc)
    # Tolerance allows for MXU f32 multi-pass vs XLA dot rounding differences.
    assert jnp.allclose(c, c_ref, atol=1e-3, rtol=1e-3), "context mismatch (masked)"
    assert jnp.allclose(w, w_ref, atol=1e-3, rtol=1e-3), "weights mismatch (masked)"

    # Unmasked path, context only.
    c2 = luong_attention_forward(query, context, weight_t, bias_p)
    c2 = jax.block_until_ready(c2)
    s2_ref = jnp.einsum('bqh,blh->bql', qb, e_ref)
    c2_ref = jnp.transpose(jax.nn.softmax(s2_ref, axis=2) @ cb, (1, 0, 2))
    assert jnp.allclose(c2, c2_ref, atol=1e-3, rtol=1e-3), "context mismatch (unmasked)"

    print("KERNEL_OK")
</pallas_src>

<mosaic_0001>
module attributes {stable_mosaic.version = 11 : i64} {
  func.func @kernel(%arg0: i32, %arg1: memref<2x8x128xf32, #tpu.memory_space<vmem>>, %arg2: memref<2x16x128xf32, #tpu.memory_space<vmem>>, %arg3: memref<128x128xf32, #tpu.memory_space<vmem>>, %arg4: memref<1x128xf32, #tpu.memory_space<vmem>>, %arg5: memref<2x1x16xf32, #tpu.memory_space<vmem>>, %arg6: memref<2x8x128xf32, #tpu.memory_space<vmem>>, %arg7: memref<2x8x16xf32, #tpu.memory_space<vmem>>) attributes {dimension_semantics = [#tpu.dimension_semantics<parallel>], iteration_bounds = array<i64: 2>, scalar_prefetch = 0 : i64, scratch_operands = 0 : i64, tpu.core_type = #tpu.core_type<tc>, window_params = [{transform_indices = @transform_0, window_bounds = array<i64: 2, 8, 128>}, {transform_indices = @transform_1, window_bounds = array<i64: 2, 16, 128>}, {pipeline_mode = #tpu.pipeline_mode<synchronous>, transform_indices = @transform_2, window_bounds = array<i64: 128, 128>}, {pipeline_mode = #tpu.pipeline_mode<synchronous>, transform_indices = @transform_3, window_bounds = array<i64: 1, 128>}, {transform_indices = @transform_4, window_bounds = array<i64: 2, 1, 16>}, {transform_indices = @transform_5, window_bounds = array<i64: 2, 8, 128>}, {transform_indices = @transform_6, window_bounds = array<i64: 2, 8, 16>}]} {
    %c0 = arith.constant 0 : index
    %c0_0 = arith.constant 0 : index
    %c0_1 = arith.constant 0 : index
    %0 = vector.load %arg1[%c0, %c0_0, %c0_1] : memref<2x8x128xf32, #tpu.memory_space<vmem>>, vector<2x8x128xf32>
    %c0_2 = arith.constant 0 : index
    %c0_3 = arith.constant 0 : index
    %c0_4 = arith.constant 0 : index
    %1 = vector.load %arg2[%c0_2, %c0_3, %c0_4] : memref<2x16x128xf32, #tpu.memory_space<vmem>>, vector<2x16x128xf32>
    %2 = vector.shape_cast %1 : vector<2x16x128xf32> to vector<32x128xf32>
    %c0_5 = arith.constant 0 : index
    %c0_6 = arith.constant 0 : index
    %3 = vector.load %arg3[%c0_5, %c0_6] : memref<128x128xf32, #tpu.memory_space<vmem>>, vector<128x128xf32>
    %cst = arith.constant dense<0.000000e+00> : vector<32x128xf32>
    %4 = tpu.matmul %2, %3, %cst {dimension_numbers = #tpu.dot_dimension_numbers<[1], [0], [0], [1], [0, 0, 1, 1], [], []>} : vector<32x128xf32>, vector<128x128xf32>, vector<32x128xf32> -> vector<32x128xf32>
    %c0_7 = arith.constant 0 : index
    %c0_8 = arith.constant 0 : index
    %5 = vector.load %arg4[%c0_7, %c0_8] : memref<1x128xf32, #tpu.memory_space<vmem>>, vector<1x128xf32>
    %6 = vector.broadcast %5 : vector<1x128xf32> to vector<32x128xf32>
    %7 = arith.addf %4, %6 : vector<32x128xf32>
    %8 = vector.shape_cast %7 : vector<32x128xf32> to vector<2x16x128xf32>
    %cst_9 = arith.constant dense<0.000000e+00> : vector<2x8x16xf32>
    %9 = tpu.matmul %0, %8, %cst_9 {dimension_numbers = #tpu.dot_dimension_numbers<[2], [2], [1], [1], [0, 0, 0, 1, 1, 1], [0], [0]>} : vector<2x8x128xf32>, vector<2x16x128xf32>, vector<2x8x16xf32> -> vector<2x8x16xf32>
    %c0_10 = arith.constant 0 : index
    %c0_11 = arith.constant 0 : index
    %c0_12 = arith.constant 0 : index
    %10 = vector.load %arg5[%c0_10, %c0_11, %c0_12] : memref<2x1x16xf32, #tpu.memory_space<vmem>>, vector<2x1x16xf32>
    %11 = vector.broadcast %10 : vector<2x1x16xf32> to vector<2x8x16xf32>
    %12 = arith.addf %9, %11 : vector<2x8x16xf32>
    %cst_13 = arith.constant dense<0xFF800000> : vector<2x8xf32>
    %13 = vector.multi_reduction <maximumf>, %12, %cst_13 [2] : vector<2x8x16xf32> to vector<2x8xf32>
    %14 = vector.shape_cast %13 : vector<2x8xf32> to vector<2x8x1xf32>
    %15 = vector.broadcast %14 : vector<2x8x1xf32> to vector<2x8x16xf32>
    %16 = arith.subf %12, %15 : vector<2x8x16xf32>
    %17 = math.exp %16 : vector<2x8x16xf32>
    %cst_14 = arith.constant dense<0.000000e+00> : vector<2x8xf32>
    %18 = vector.multi_reduction <add>, %17, %cst_14 [2] : vector<2x8x16xf32> to vector<2x8xf32>
    %19 = vector.shape_cast %18 : vector<2x8xf32> to vector<2x8x1xf32>
    %20 = vector.broadcast %19 : vector<2x8x1xf32> to vector<2x8x16xf32>
    %21 = arith.divf %17, %20 : vector<2x8x16xf32>
    %cst_15 = arith.constant dense<0.000000e+00> : vector<2x8x128xf32>
    %22 = tpu.matmul %21, %1, %cst_15 {dimension_numbers = #tpu.dot_dimension_numbers<[2], [1], [1], [2], [0, 0, 0, 1, 1, 2], [0], [0]>} : vector<2x8x16xf32>, vector<2x16x128xf32>, vector<2x8x128xf32> -> vector<2x8x128xf32>
    %c0_16 = arith.constant 0 : index
    %c0_17 = arith.constant 0 : index
    %c0_18 = arith.constant 0 : index
    %23 = vector.load %arg6[%c0_16, %c0_17, %c0_18] : memref<2x8x128xf32, #tpu.memory_space<vmem>>, vector<2x8x128xf32>
    tpu.vector_store %arg6[%c0_16, %c0_17, %c0_18], %22 {strides = array<i32>} : memref<2x8x128xf32, #tpu.memory_space<vmem>>, vector<2x8x128xf32>,
    %c0_19 = arith.constant 0 : index
    %c0_20 = arith.constant 0 : index
    %c0_21 = arith.constant 0 : index
    %24 = vector.load %arg7[%c0_19, %c0_20, %c0_21] : memref<2x8x16xf32, #tpu.memory_space<vmem>>, vector<2x8x16xf32>
    tpu.vector_store %arg7[%c0_19, %c0_20, %c0_21], %21 {strides = array<i32>} : memref<2x8x16xf32, #tpu.memory_space<vmem>>, vector<2x8x16xf32>,
    return
  }
  func.func @transform_0(%arg0: i32) -> (i32, i32, i32) {
    %c0_i32 = arith.constant 0 : i32
    %c0_i32_0 = arith.constant 0 : i32
    %c0_i32_1 = arith.constant 0 : i32
    return %arg0, %c0_i32, %c0_i32_0 : i32, i32, i32
  }
  func.func @transform_1(%arg0: i32) -> (i32, i32, i32) {
    %c0_i32 = arith.constant 0 : i32
    %c0_i32_0 = arith.constant 0 : i32
    %c0_i32_1 = arith.constant 0 : i32
    return %arg0, %c0_i32, %c0_i32_0 : i32, i32, i32
  }
  func.func @transform_2(%arg0: i32) -> (i32, i32) {
    %c0_i32 = arith.constant 0 : i32
    %c0_i32_0 = arith.constant 0 : i32
    %c0_i32_1 = arith.constant 0 : i32
    return %c0_i32, %c0_i32_0 : i32, i32
  }
  func.func @transform_3(%arg0: i32) -> (i32, i32) {
    %c0_i32 = arith.constant 0 : i32
    %c0_i32_0 = arith.constant 0 : i32
    %c0_i32_1 = arith.constant 0 : i32
    return %c0_i32, %c0_i32_0 : i32, i32
  }
  func.func @transform_4(%arg0: i32) -> (i32, i32, i32) {
    %c0_i32 = arith.constant 0 : i32
    %c0_i32_0 = arith.constant 0 : i32
    %c0_i32_1 = arith.constant 0 : i32
    return %arg0, %c0_i32, %c0_i32_0 : i32, i32, i32
  }
  func.func @transform_5(%arg0: i32) -> (i32, i32, i32) {
    %c0_i32 = arith.constant 0 : i32
    %c0_i32_0 = arith.constant 0 : i32
    %c0_i32_1 = arith.constant 0 : i32
    return %arg0, %c0_i32, %c0_i32_0 : i32, i32, i32
  }
  func.func @transform_6(%arg0: i32) -> (i32, i32, i32) {
    %c0_i32 = arith.constant 0 : i32
    %c0_i32_0 = arith.constant 0 : i32
    %c0_i32_1 = arith.constant 0 : i32
    return %arg0, %c0_i32, %c0_i32_0 : i32, i32, i32
  }
}

</mosaic_0001>

<bundles_post_ra>
// kernel: tpu_custom_call.1
= control target key start
LH: loop header
LB: loop body
LE: loop exit
PB: predicated region body
PF: predicated region fallthrough
CT: control target
= control target key end

     0   :  { %s1439_s0 = inlined_call_operand.hbm [shape: f32[4,8,128], index: 0, kind: input, shape index: {}]   ;;  %s1440_s1 = inlined_call_operand.hbm [shape: f32[4,16,128], index: 1, kind: input, shape index: {}]   ;;  %s1441_s2 = inlined_call_operand.hbm [shape: f32[128,128], index: 2, kind: input, shape index: {}]   ;;  %s1442_s3 = inlined_call_operand.vmem [shape: f32[1,128], index: 3, kind: input, shape index: {}]   ;;  %s1443_s4 = inlined_call_operand.hbm [shape: f32[4,1,16], index: 4, kind: input, shape index: {}]   ;;  %s1444_s5 = inlined_call_operand.hbm [shape: f32[4,8,128], index: 5, kind: output, shape index: {0}]   ;;  %s1445_s6 = inlined_call_operand.hbm [shape: f32[4,8,16], index: 6, kind: output, shape index: {1}]  }
   0x1   :  { %1455 = sst [smem:[#allocation24_spill]] %s1439_s0 }
   0x2   :  { %1456 = sst [smem:[#allocation25_spill]] %s1441_s2 }
   0x3   :  { %12 = vsyncpa [#allocation3], 0 }
   0x4   :  { %14 = vsyncpa [#allocation3 + $0x1], 0 }
   0x5   :  { %15 = vsyncpa [#allocation6], 0 }
   0x6   :  { %17 = vsyncpa [#allocation6 + $0x1], 0 }
   0x7   :  { %18 = vsyncpa [#allocation9], 0 }
   0x8   :  { %20 = vsyncpa [#allocation9 + $0x1], 0 }
   0x9   :  { %21 = vsyncpa [#allocation4], 0 }
   0xa   :  { %23 = vsyncpa [#allocation4 + $0x1], 0 }
   0xb   :  { %24 = vsyncpa [#allocation12], 0 }
   0xc   :  { %26 = vsyncpa [#allocation12 + $0x1], 0  ;;  %s1187_s21 = smov 0   ;;  %s1189_s22 = smov 0  }
   0xd   :  { %s1191_s23 = smov 0   ;;  %s1193_s24 = smov 0  }
   0xe LB: > { %1457 = sst [smem:[#allocation19_spill]] %s1131_s21  ;;  %s1208_s25 = sadd.s32 4294967295, %s1143_s24   ;;  %s1143_s24 = sphi %s1193_s24, %s1474_s24   ;;  %s1139_s23 = sphi %s1191_s23, %s1476_s23   ;;  %s1135_s22 = sphi %s1189_s22, %s1478_s22   ;;  %s1131_s21 = sphi %s1187_s21, %s1477_s21  }
   0xf   : > { %1458 = sst [smem:[#allocation20_spill]] %s1139_s23  ;;  %s789_s26 = sadd.s32 4294967294, %s1143_s24  }
  0x10   : > { %p52_p0 = scmp.ne.s32.totalorder %s1135_s22, %s1131_s21  ;;  %p53_p1 = scmp.eq.s32.totalorder %s1208_s25, 0 }
  0x11   : > { %p170_p2 = scmp.eq.s32.totalorder %s1208_s25, 1  ;;  %p176_p3 = scmp.eq.s32.totalorder %s789_s26, 1 }
  0x12   : > { %p1217_p4 = por %p53_p1, %p52_p0  ;;  %p790_p5 = scmp.ge.s32.totalorder %s1143_s24, 1 }
  0x13   : > { %p1222_p6 = por %p176_p3, %p52_p0  ;;  %p209_p7 = scmp.lt.s32.totalorder %s1143_s24, 3 }
  0x14   : > { %s1462_s2 = sld [smem:[#allocation25_spill]]  ;;  %s1145_s9 = smov [#allocation7]  }
  0x15   : > { %s1460_s28 = scalar_select %p1222_p6, 1, 0 }
  0x16   : > { %p1230_p8 = pnand %p790_p5, %p209_p7  ;;  %s222_s10 = sshll.u32 %s1145_s9, 4  ;;  %s223_s10 = int_to_ptr.vmem [resolvable:$true] %s222_s10 }
  0x17   : > { %1461 = sst [smem:[#allocation21_spill]] %s1460_s28  ;;  %s1240_s11 = sadd.s32 1, %s1143_s24  }
  0x18   : > { %p838_p9 = pneg %p1230_p8  ;;  %1464 = sst [smem:[#allocation22_spill]] %s1240_s11 }
  0x19   : > { %s1446_s12 = smov 128   ;;  %s1448_s13 = smov 8  }
  0x1a   : > { %s220_s7 = sshll.u32 %s1462_s2, 4  ;;  %p839_p10 = pnand %p838_p9, %p53_p1  ;;  %s221_s7 = int_to_ptr.hbm [resolvable:$true] %s220_s7 }
  0x1b   : > { %s36_s14 = ssub.s32 %s1143_s24, %s1240_s11  ;;  %s39_s15 = sadd.s32 1, %s1139_s23 }
  0x1c   : > { %841 = dma.hbm_to_vmem [thread:$0]  (!%p839_p10), %s221_s7, 2048, %s223_s10, [#allocation6], %s1446_s12, %s1446_s12, %s1448_s13  }
  0x1d   : > { %p37_p12 = scmp.eq.s32.totalorder %s36_s14, 0  ;;  %p46_p13 = scmp.ne.s32.totalorder %s1139_s23, %s1135_s22 }
  0x1e   : > { %p47_p0 = scmp.eq.s32.totalorder %s1143_s24, 0  ;;  %p860_p3 = scmp.lt.s32.totalorder %s1143_s24, 2 }
  0x1f   : > { %s1253_s16 = scalar_select %p37_p12, %s1139_s23, %s39_s15  }
  0x20   : > { %p48_p5 = por %p47_p0, %p46_p13  ;;  %p1257_p7 = por %p170_p2, %p46_p13 }
  0x21   : > { %1465 = sst [smem:[#allocation23_spill]] %s1253_s16  ;;  %s1262_s18 = sand.u32 1, %s1139_s23  }
  0x22   : > { %s819_s19 = sshll.u32 %s1143_s24, 4  ;;  %s793_s20 = sshll.u32 %s1262_s18, 4 }
  0x23   : > { %s1467_s0 = sld [smem:[#allocation24_spill]]  ;;  %s243_s9 = scalar_lea.vmem [#allocation2], %s793_s20 }
  0x24   : > { %s251_s10 = sshll.u32 %s243_s9, 4  ;;  %p1271_p2 = pnand %p860_p3, %p48_p5  ;;  %s252_s10 = int_to_ptr.vmem [resolvable:$true] %s251_s10 }
  0x25   : > { %s261_s15 = sand.u32 1, %s1143_s24   ;;  %s796_s12 = sshll.u32 %s1262_s18, 5 }
  0x26   : > { %s240_s13 = scalar_lea.sflag [#allocation3], %s1262_s18  ;;  %p947_p10 = pneg %p1271_p2 }
  0x29   : > { %s248_s30 = scalar_lea.hbm %s1467_s0, %s819_s19  ;;  %s950_s26 = scalar_lea.hbm %s1467_s0, 32 }
  0x2a   : > { %s249_s7 = sshll.u32 %s248_s30, 4  ;;  %s250_s7 = int_to_ptr.hbm [resolvable:$true] %s249_s7 }
  0x2b   : > { %s943_s2 = sshra.s32 %s250_s7, 4  ;;  %s944_s2 = int_to_ptr.hbm [resolvable:$true] %s943_s2 }
  0x2c   : > { %s945_s16 = scalar_lea.hbm %s944_s2, 16  ;;  %p951_p0 = scmp.lt.s32.totalorder %s944_s2, %s1467_s0 }
  0x2d   : > { %p946_p9 = scmp.ne.s32.totalorder %s944_s2, %s945_s16  ;;  %p952_p3 = scmp.lt.s32.totalorder %s950_s26, %s945_s16 }
  0x2f   : > { %p948_p12 = pnand %p947_p10, %p946_p9  ;;  %p953_p5 = por %p952_p3, %p951_p0 }
  0x31   : > { %p949_p13 = pneg %p948_p12 }
  0x33   : > { %p954_p11 = pnand %p953_p5, %p949_p13 }
  0x35   : > { %957 = shalt.err (!%p954_p11)
}
  0x36   : > { %s1469_s9 = smov 8   ;;  %s1470_s23 = smov 128  }
  0x37   : > { %845 = dma.hbm_to_vmem [thread:$0]  (!%p1271_p2), %s250_s7, 256, %s252_s10, %s240_s13, %s1470_s23, %s1470_s23, %s1469_s9  }
  0x38   : > { %s821_s11 = sshll.u32 %s1143_s24, 5  ;;  %s265_s19 = scalar_lea.vmem [#allocation5], %s796_s12 }
  0x39   : > { %s274_s20 = sshll.u32 %s265_s19, 4  ;;  %s271_s2 = scalar_lea.hbm %s1440_s1, %s821_s11  ;;  %s275_s20 = int_to_ptr.vmem [resolvable:$true] %s274_s20 }
  0x3a   : > { %s272_s16 = sshll.u32 %s271_s2, 4  ;;  %s800_s26 = sshll.u32 %s1262_s18, 1  ;;  %s273_s16 = int_to_ptr.hbm [resolvable:$true] %s272_s16 }
  0x3b   : > { %s262_s29 = scalar_lea.sflag [#allocation6], %s261_s15  ;;  %s973_s30 = sshra.s32 %s273_s16, 4  ;;  %s974_s30 = int_to_ptr.hbm [resolvable:$true] %s973_s30 }
  0x3c   : > { %s975_s0 = scalar_lea.hbm %s974_s30, 32  ;;  %s980_s7 = scalar_lea.hbm %s1440_s1, 64 }
  0x3d   : > { %p976_p11 = scmp.ne.s32.totalorder %s974_s30, %s975_s0  ;;  %p981_p13 = scmp.lt.s32.totalorder %s974_s30, %s1440_s1 }
  0x3e   : > { %p982_p0 = scmp.lt.s32.totalorder %s980_s7, %s975_s0 }
  0x3f   : > { %p978_p9 = pnand %p976_p11, %p947_p10 }
  0x40   : > { %p983_p3 = por %p982_p0, %p981_p13 }
  0x41   : > { %p979_p12 = pneg %p978_p9 }
  0x43   : > { %p984_p5 = pnand %p983_p3, %p979_p12 }
  0x45   : > { %987 = shalt.err (!%p984_p5)
}
  0x46   : > { %848 = dma.hbm_to_vmem [thread:$0]  (!%p1271_p2), %s273_s16, 512, %s275_s20, %s262_s29, %s1470_s23, %s1470_s23, %s1469_s9  }
  0x47   : > { %s801_s28 = sshll.u32 %s1143_s24, 1  ;;  %s288_s2 = scalar_lea.vmem [#allocation8], %s800_s26 }
  0x48   : > { %s292_s19 = scalar_lea.hbm %s1443_s4, %s801_s28  ;;  %s295_s30 = sshll.u32 %s288_s2, 4  ;;  %s296_s30 = int_to_ptr.vmem [resolvable:$true] %s295_s30 }
  0x49   : > { %s293_s0 = sshll.u32 %s292_s19, 4  ;;  %s285_s13 = scalar_lea.sflag [#allocation9], %s1262_s18  ;;  %s294_s0 = int_to_ptr.hbm [resolvable:$true] %s293_s0 }
  0x4a   : > { %s1003_s12 = sshra.s32 %s294_s0, 4  ;;  %s1010_s20 = scalar_lea.hbm %s1443_s4, 4  ;;  %s1004_s12 = int_to_ptr.hbm [resolvable:$true] %s1003_s12 }
  0x4b   : > { %s1005_s7 = scalar_lea.hbm %s1004_s12, 2  ;;  %p1011_p13 = scmp.lt.s32.totalorder %s1004_s12, %s1443_s4 }
  0x4c   : > { %p1006_p11 = scmp.ne.s32.totalorder %s1004_s12, %s1005_s7  ;;  %p1012_p0 = scmp.lt.s32.totalorder %s1010_s20, %s1005_s7 }
  0x4e   : > { %p1008_p9 = pnand %p1006_p11, %p947_p10  ;;  %p1013_p3 = por %p1012_p0, %p1011_p13 }
  0x50   : > { %p1009_p12 = pneg %p1008_p9 }
  0x52   : > { %p1014_p5 = pnand %p1013_p3, %p1009_p12 }
  0x54   : > { %1017 = shalt.err (!%p1014_p5)
}
  0x55   : > { %s1148_s18 = smov 16   ;;  %s1149_s26 = smov 1  }
  0x56   : > { %851 = dma.hbm_to_vmem [thread:$0]  (!%p1271_p2), %s294_s0, 32, %s296_s30, %s285_s13, %s1148_s18, %s1148_s18, %s1149_s26  }
  0x57   : > { %307 = sbr.rel (%p1230_p8) target bundleno = 825 (0x339), region = 40  ;;  %s1332_s10 = sand.u32 (!%p1230_p8), 1, %s1135_s22  }
  0x58   : > { %s1335_s21 = sshll.u32 (!%p1230_p8), %s1332_s10, 4  ;;  %s310_s28 = scalar_lea.sflag (!%p1230_p8), [#allocation3], %s1332_s10 }
  0x59   : > { %s313_s11 = scalar_lea.vmem (!%p1230_p8), [#allocation2], %s1335_s21 }
  0x5c   : > { %1106 = dma.done.wait (%p1217_p4), %s310_s28, 256  }
  0x5d   : > { %1108 = vsyncadd (%p1217_p4), %s310_s28, 4294967040  ;;  %s319_s8 = sand.u32 1, %s1208_s25   ;;  %s804_s14 = sshll.u32 %s1332_s10, 5 }
  0x5e   : > { %s320_s15 = scalar_lea.sflag [#allocation6], %s319_s8  ;;  %s1345_s19 = scalar_lea.vmem [#allocation5], %s804_s14 }
  0x5f   : > { %1110 = dma.done.wait (%p1217_p4), %s320_s15, 512  }
  0x60   : > { %1112 = vsyncadd (%p1217_p4), %s320_s15, 4294966784 }
  0x61   : > { %1114 = dma.done.wait (%p53_p1), [#allocation6], 2048  }
  0x62   : > { %1116 = vsyncadd (%p53_p1), [#allocation6], 4294965248  ;;  %s806_s2 = sshll.u32 %s1332_s10, 1  ;;  %s335_s30 = scalar_lea.sflag [#allocation9], %s1332_s10 }
  0x63   : > { %s1357_s0 = scalar_lea.vmem [#allocation8], %s806_s2 }
  0x64   : > { %1118 = dma.done.wait (%p1217_p4), %s335_s30, 32  }
  0x65   : > { %1120 = vsyncadd (%p1217_p4), %s335_s30, 4294967264  ;;  %v409_v0 = vld [vmem:[#allocation7 + $0x78] sm:$0xff]  ;;  %v408_v1 = vld [vmem:[#allocation7 + $0x70] sm:$0xff]  ;;  %vm491_vm0 = vcmask 130048   ;;  %s382_s12 = scalar_lea.vmem [#allocation11], %s1335_s21  ;;  %s822_s7 = sshll.u32 %s1208_s25, 4 }
  0x66   : > { %414 = vmatpush.msra.mxu0 %v409_v0  ;;  %v407_v2 = vld [vmem:[#allocation7 + $0x68] sm:$0xff]  ;;  %v406_v3 = vld [vmem:[#allocation7 + $0x60] sm:$0xff]  ;;  %v405_v4 = vld [vmem:[#allocation7 + $0x58] sm:$0xff]  ;;  %s625_s23 = sshll.u32 %s382_s12, 4  ;;  %s624_s16 = scalar_lea.hbm %s1445_s6, %s822_s7  ;;  %s626_s23 = int_to_ptr.vmem [resolvable:$true] %s625_s23 }
  0x67   : > { %v391_v5 = vld [vmem:[%s1345_s19 + $0x8] sm:$0xff]  ;;  %v390_v6 = vld [vmem:[%s1345_s19] sm:$0xff]  ;;  %v404_v7 = vld [vmem:[#allocation7 + $0x50] sm:$0xff]  ;;  %s627_s29 = sshll.u32 %s624_s16, 4  ;;  %s596_s18 = scalar_lea.sflag [#allocation12], %s1332_s10  ;;  %s628_s29 = int_to_ptr.hbm [resolvable:$true] %s627_s29 }
  0x68   : > { %415 = vmatpush.msra.mxu0 %v408_v1  ;;  %557 = vmatpush.msra.mxu3 %v391_v5  ;;  %v403_v8 = vld [vmem:[#allocation7 + $0x48] sm:$0xff]  ;;  %v402_v9 = vld [vmem:[#allocation7 + $0x40] sm:$0xff]  ;;  %v401_v10 = vld [vmem:[#allocation7 + $0x38] sm:$0xff]  ;;  %s1047_s26 = sshra.s32 %s628_s29, 4  ;;  %s1053_s25 = scalar_lea.hbm %s1445_s6, 32  ;;  %s1048_s26 = int_to_ptr.hbm [resolvable:$true] %s1047_s26 }
  0x69   : > { %v400_v11 = vld [vmem:[#allocation7 + $0x30] sm:$0xff]  ;;  %v393_v12 = vld [vmem:[%s1345_s19 + $0x18] sm:$0xff]  ;;  %v399_v13 = vld [vmem:[#allocation7 + $0x28] sm:$0xff]  ;;  %s1049_s28 = scalar_lea.hbm %s1048_s26, 16  ;;  %p1054_p2 = scmp.lt.s32.totalorder %s1048_s26, %s1445_s6 }
  0x6a   : > { %416 = vmatpush.msra.mxu0 %v407_v2  ;;  %558 = vmatpush.msra.mxu3 %v390_v6  ;;  %v392_v14 = vld [vmem:[%s1345_s19 + $0x10] sm:$0xff]  ;;  %v398_v15 = vld [vmem:[#allocation7 + $0x20] sm:$0xff]  ;;  %v397_v16 = vld [vmem:[#allocation7 + $0x18] sm:$0xff]  ;;  %p1050_p1 = scmp.ne.s32.totalorder %s1048_s26, %s1049_s28  ;;  %p1055_p10 = scmp.lt.s32.totalorder %s1053_s25, %s1049_s28 }
  0x6b   : > { %v396_v17 = vld [vmem:[#allocation7 + $0x10] sm:$0xff]  ;;  %v395_v18 = vld [vmem:[#allocation7 + $0x8] sm:$0xff]  ;;  %v394_v19 = vld [vmem:[#allocation7] sm:$0xff] }
  0x6c   : > { %417 = vmatpush.msra.mxu0 %v406_v3  ;;  %580 = vmatpush.msrb.mxu3 %v393_v12  ;;  %v902_v21 = vld [vmem:[%s1442_s3] ss:$0 sm:$0xff]  ;;  %v389_v30 = vld [vmem:[%s313_s11 + $0x8] sm:$0xff]  ;;  %v904_v35 = vld [vmem:[%s1357_s0 + $0x1] ss:$0 sm:$0xff]  ;;  %p1051_p4 = pnand %p1050_p1, %p1257_p7  ;;  %p1056_p11 = por %p1055_p10, %p1054_p2 }
  0x6d   : > { %v388_v25 = vld [vmem:[%s313_s11] sm:$0xff] }
  0x6e   : > { %418 = vmatpush.msra.mxu0 %v405_v4  ;;  %581 = vmatpush.msrb.mxu3 %v392_v14  ;;  %v903_v31 = vld [vmem:[%s1357_s0] ss:$0 sm:$0xff]  ;;  %p1052_p8 = pneg %p1051_p4 }
  0x70   : > { %419 = vmatpush.msra.mxu0 %v404_v7  ;;  %p1057_p9 = pnand %p1056_p11, %p1052_p8 }
  0x72   : > { %420 = vmatpush.msra.mxu0 %v403_v8 }
  0x74   : > { %421 = vmatpush.msra.mxu0 %v402_v9 }
  0x76   : > { %422 = vmatpush.msra.mxu0 %v401_v10 }
  0x78   : > { %423 = vmatpush.msra.mxu0 %v400_v11 }
  0x7a   : > { %424 = vmatpush.msra.mxu0 %v399_v13 }
  0x7c   : > { %425 = vmatpush.msra.mxu0 %v398_v15 }
  0x7e   : > { %426 = vmatpush.msra.mxu0 %v397_v16 }
  0x80   : > { %427 = vmatpush.msra.mxu0 %v396_v17 }
  0x82   : > { %428 = vmatpush.msra.mxu0 %v395_v18 }
  0x84   : > { %429 = vmatpush.msra.mxu0 %v394_v19 }
  0x85   : > { %430 = vmatmul.f32.vlgmr.msra.gmra.mxu0 %v390_v6 }
  0x8d   : > { %433 = vmatmul.f32.gmra.mxu0 %v391_v5 }
  0x95   : > { %436 = vmatmul.f32.gmra.mxu0 %v392_v14 }
  0x9d   : > { %439 = vmatmul.f32.gmra.mxu0 %v393_v12 }
 0x102   : > { %v431_v20 = vpop.f32.mrf.mxu0 }
 0x103   : > { %v432_v24 = vadd.f32 %v902_v21, %v431_v20 }
 0x10a   : > { %v434_v22 = vpop.f32.mrf.mxu0 }
 0x10b   : > { %v435_v23 = vadd.f32 %v902_v21, %v434_v22 }
 0x10d   : > { %465 = vmatpush.xpose.msra.mxu1 %v435_v23 }
 0x111   : > { %466 = vmatpush.xpose.msra.mxu1 %v432_v24 }
 0x112   : > { %v437_v26 = vpop.f32.mrf.mxu0 }
 0x113   : > { %v438_v29 = vadd.f32 %v902_v21, %v437_v26 }
 0x114   : > { %467 = vmatmul.f32.vlgmr.msra.gmra.mxu1 %v388_v25 }
 0x11a   : > { %v440_v27 = vpop.f32.mrf.mxu0 }
 0x11b   : > { %v441_v28 = vadd.f32 %v902_v21, %v440_v27 }
 0x11d   : > { %485 = vmatpush.xpose.msra.mxu2 %v441_v28 }
 0x121   : > { %486 = vmatpush.xpose.msra.mxu2 %v438_v29 }
 0x124   : > { %487 = vmatmul.f32.vlgmr.msra.gmra.mxu2 %v389_v30 }
 0x191   : > { %v468_v32 = vpop.f32.mrf.mxu1 }
 0x192   : > { %v469_v33 = vadd.f32 %v903_v31, %v468_v32 }
 0x194   : > { %v492_v34 = vsel %vm491_vm0, %v469_v33, -inf }
 0x195   : > { %493 = vmax.xlane.f32.xlu0 %v492_v34 }
 0x1a7   : > { %v488_v36 = vpop.f32.mrf.mxu2 }
 0x1a8   : > { %v489_v37 = vadd.f32 %v904_v35, %v488_v36 }
 0x1aa   : > { %v495_v38 = vsel %vm491_vm0, %v489_v37, -inf }
 0x1ab   : > { %496 = vmax.xlane.f32.xlu0 %v495_v38 }
 0x208   : > { %v494_v39 = vpop.xlane.xlu0 %493 }
 0x209   : > { %v498_v40 = vsub.f32 %v469_v33, %v494_v39 }
 0x20b   : > { %v500_v41 = vmul.f32 1.442695, %v498_v40 }
 0x20d   : > { %905 = vpow2.f32 %v500_v41 }
 0x213   : > { %v906_v42 = vpop.eup %905 }
 0x214   : > { %v504_v43 = vsel %vm491_vm0, %v906_v42, 0.0 }
 0x215   : > { %505 = vadd.xlane.f32.xlu1 %v504_v43 }
 0x21e   : > { %v497_v44 = vpop.xlane.xlu0 %496 }
 0x21f   : > { %v499_v45 = vsub.f32 %v489_v37, %v497_v44 }
 0x221   : > { %v502_v46 = vmul.f32 1.442695, %v499_v45 }
 0x223   : > { %907 = vpow2.f32 %v502_v46 }
 0x229   : > { %v908_v47 = vpop.eup %907 }
 0x22a   : > { %v507_v48 = vsel %vm491_vm0, %v908_v47, 0.0 }
 0x22b   : > { %508 = vadd.xlane.f32.xlu1 %v507_v48 }
 0x288   : > { %v506_v49 = vpop.xlane.xlu1 %505 }
 0x289   : > { %909 = vrcp.f32 %v506_v49  ;;  %v521_v53 = vand.u32 2147483648, %v506_v49  ;;  %v519_v55 = vand.u32 2147483647, %v506_v49  ;;  %vm515_vm2 = vweird.f32 %v506_v49 }
 0x28b   : > { %v522_v57 = vor.u32 1.1754944e-38, %v521_v53  ;;  %vm520_vm4 = vcmp.eq.f32.partialorder %v519_v55, 8.507059e+37 }
 0x28f   : > { %v910_v50 = vpop.eup %909 }
 0x290   : > { %v511_v51 = vmul.f32 %v910_v50, %v506_v49  ;;  %vm516_vm1 = vweird.f32 %v910_v50 }
 0x291   : > { %vm517_vm3 = vmor %vm515_vm2, %vm516_vm1 }
 0x292   : > { %v512_v52 = vsub.f32 1.0, %v511_v51 }
 0x294   : > { %v513_v54 = vmul.f32 %v910_v50, %v512_v52 }
 0x296   : > { %v514_v56 = vadd.f32 %v910_v50, %v513_v54 }
 0x298   : > { %v518_v58 = vsel %vm517_vm3, %v910_v50, %v514_v56 }
 0x299   : > { %v523_v59 = vsel %vm520_vm4, %v522_v57, %v518_v58 }
 0x29a   : > { %v524_v60 = vmul.f32 %v906_v42, %v523_v59 }
 0x29c   : > { %809 = vmatmul.msk.f32.vlgmr.msra.gmra.mxu3 %vm491_vm0, %v524_v60  ;;  %588 = vst.msk [vmem:[%s382_s12] sm:$0xff] %vm491_vm0, %v524_v60 }
 0x29e   : > { %v509_v61 = vpop.xlane.xlu1 %508 }
 0x29f   : > { %911 = vrcp.f32 %v509_v61  ;;  %v536_v1 = vand.u32 2147483648, %v509_v61  ;;  %v534_v3 = vand.u32 2147483647, %v509_v61  ;;  %vm530_vm6 = vweird.f32 %v509_v61 }
 0x2a1   : > { %v537_v5 = vor.u32 1.1754944e-38, %v536_v1  ;;  %vm535_vm8 = vcmp.eq.f32.partialorder %v534_v3, 8.507059e+37 }
 0x2a5   : > { %v912_v62 = vpop.eup %911 }
 0x2a6   : > { %v526_v63 = vmul.f32 %v912_v62, %v509_v61  ;;  %vm531_vm5 = vweird.f32 %v912_v62 }
 0x2a7   : > { %vm532_vm7 = vmor %vm530_vm6, %vm531_vm5 }
 0x2a8   : > { %v527_v0 = vsub.f32 1.0, %v526_v63 }
 0x2aa   : > { %v528_v2 = vmul.f32 %v912_v62, %v527_v0 }
 0x2ac   : > { %v529_v4 = vadd.f32 %v912_v62, %v528_v2 }
 0x2ae   : > { %v533_v6 = vsel %vm532_vm7, %v912_v62, %v529_v4 }
 0x2af   : > { %v538_v7 = vsel %vm535_vm8, %v537_v5, %v533_v6 }
 0x2b0   : > { %v539_v8 = vmul.f32 %v908_v47, %v538_v7 }
 0x2b2   : > { %810 = vmatmul.msk.f32.vlgmr.msrb.gmra.mxu3 %vm491_vm0, %v539_v8  ;;  %589 = vst.msk [vmem:[%s382_s12 + $0x8] sm:$0xff] %vm491_vm0, %v539_v8 }
 0x2b3   : > { %1060 = shalt.err (!%p1057_p9)
}
 0x2b4   : > { %s1150_s19 = smov 128   ;;  %s1151_s2 = smov 8  }
 0x2b5   : > { %835 = dma.vmem_to_hbm [thread:$0]  (%p1257_p7), %s626_s23, 256, %s628_s29, %s596_s18, %s1150_s19, %s1150_s19, %s1151_s2  }
 0x2b6   : > { %s375_s30 = scalar_lea.vmem [#allocation10], %s1335_s21  ;;  %s607_s13 = scalar_lea.hbm %s1444_s5, %s822_s7 }
 0x2b7   : > { %s608_s12 = sshll.u32 %s375_s30, 4  ;;  %s610_s9 = sshll.u32 %s607_s13, 4  ;;  %s609_s12 = int_to_ptr.vmem [resolvable:$true] %s608_s12  ;;  %s611_s9 = int_to_ptr.hbm [resolvable:$true] %s610_s9 }
 0x2b8   : > { %s591_s20 = scalar_lea.sflag [#allocation4], %s1332_s10  ;;  %s1075_s16 = sshra.s32 %s611_s9, 4  ;;  %s1076_s16 = int_to_ptr.hbm [resolvable:$true] %s1075_s16 }
 0x2b9   : > { %s1077_s26 = scalar_lea.hbm %s1076_s16, 16  ;;  %s1081_s29 = scalar_lea.hbm %s1444_s5, 32 }
 0x2ba   : > { %p1078_p12 = scmp.ne.s32.totalorder %s1076_s16, %s1077_s26  ;;  %p1082_p3 = scmp.lt.s32.totalorder %s1076_s16, %s1444_s5 }
 0x2bb   : > { %p1083_p5 = scmp.lt.s32.totalorder %s1081_s29, %s1077_s26 }
 0x2bc   : > { %p1079_p13 = pnand %p1078_p12, %p1257_p7 }
 0x2bd   : > { %p1084_p1 = por %p1083_p5, %p1082_p3 }
 0x2be   : > { %p1080_p0 = pneg %p1079_p13 }
 0x2c0   : > { %p1085_p4 = pnand %p1084_p1, %p1080_p0 }
 0x31f   : > { %v560_v9 = vpop.f32.mrf.mxu3 }
 0x320   : > { %586 = vst [vmem:[%s375_s30] sm:$0xff] %v560_v9 }
 0x335   : > { %v583_v10 = vpop.f32.mrf.mxu3 }
 0x336   : > { %587 = vst [vmem:[%s375_s30 + $0x8] sm:$0xff] %v583_v10 }
 0x337   : > { %1088 = shalt.err (!%p1085_p4)
}
 0x338   : > { %834 = dma.vmem_to_hbm [thread:$0]  (%p1257_p7), %s609_s12, 256, %s611_s9, %s591_s20, %s1150_s19, %s1150_s19, %s1151_s2  }
 0x339 PF: > { %s1471_s10 = sld [smem:[#allocation19_spill]]  ;;  %p1473_p8 = scmp.ge.s32.totalorder %s1143_s24, 2 }
 0x33b   : > { %p853_p2 = pnand %p1473_p8, %p1222_p6 }
 0x33d   : > { %p854_p10 = pneg %p853_p2 }
 0x33f   : > { %s642_s11 = sand.u32 1, %s1471_s10  }
 0x340   : > { %s643_s8 = scalar_lea.sflag [#allocation4], %s642_s11 }
 0x341   : > { %1122 = dma.done.wait (%p854_p10), %s643_s8, 256  }
 0x342   : > { %1124 = vsyncadd (%p854_p10), %s643_s8, 4294967040  ;;  %s653_s25 = scalar_lea.sflag [#allocation12], %s642_s11 }
 0x343   : > { %1126 = dma.done.wait (%p854_p10), %s653_s25, 256  }
 0x344   : > { %1128 = vsyncadd (%p854_p10), %s653_s25, 4294967040  ;;  %s1474_s24 = sld [smem:[#allocation22_spill]]  ;;  %s1477_s21 = smov %s1135_s22 }
 0x345   : > { %s1475_s17 = sld [smem:[#allocation20_spill]] }
 0x346   : > { %s1476_s23 = sld [smem:[#allocation23_spill]] }
 0x34a   : > { %p29_p7 = scmp.ge.s32.totalorder %s1474_s24, 4  }
 0x34b   : > { %s1478_s22 = smov %s1475_s17 }
 0x34c   :  { %31 = sbr.rel (!%p29_p7) target bundleno = 14 (0xe), region = 132 }
 0x351   :  { %659 = vsyncpa [#allocation3], 1 }
 0x352   :  { %661 = vsyncpa [#allocation3 + $0x1], 1 }
 0x353   :  { %662 = vsyncpa [#allocation6], 1 }
 0x354   :  { %664 = vsyncpa [#allocation6 + $0x1], 1 }
 0x355   :  { %665 = vsyncpa [#allocation9], 1 }
 0x356   :  { %667 = vsyncpa [#allocation9 + $0x1], 1 }
 0x357   :  { %668 = vsyncpa [#allocation4], 1 }
 0x358   :  { %670 = vsyncpa [#allocation4 + $0x1], 1 }
 0x359   :  { %671 = vsyncpa [#allocation12], 1 }
 0x35a   :  { %673 = vsyncpa [#allocation12 + $0x1], 1 }

</bundles_post_ra>
